<compile_context>
chip_gen: v7x
topology: tpu7x:2x2x1
jax: 0.10.0
libtpu: 0.0.40
codegen_flags: <defaults>
</compile_context>

<pallas_src>
import functools

import jax
import jax.numpy as jnp
from jax.experimental import pallas as pl
from jax.experimental.pallas import tpu as pltpu

EPS = 1e-6


def _round_up(n: int, m: int) -> int:
    return ((n + m - 1) // m) * m


def _pick_tn(features: int, w_itemsize: int, slab_budget_bytes: int = 8 << 20) -> int:
    """Output-feature tile: a multiple of 128 dividing F whose double-buffered
    (F, tn) weight slab fits the budget; falls back to the full feature dim."""
    if features % 128 != 0:
        return features  # full-dim block (correct, just not lane-optimal)
    for tn in (features, 2048, 1024, 512, 256, 128):
        if (tn <= features and features % tn == 0
                and 2 * features * tn * w_itemsize <= slab_budget_bytes):
            return tn
    return 128


def _skip_kernel(x_ref, alpha_ref, beta_ref, w_ref, b_ref, o_ref, *, eps, tn):
    x = x_ref[...].astype(jnp.float32)                        # (TR, F)
    f = x.shape[-1]

    # --- LayerNormalization (unbiased std, divide by std + eps) ---
    mean = jnp.mean(x, axis=-1, keepdims=True)                # (TR, 1)
    diff = x - mean
    var_unbiased = jnp.sum(diff * diff, axis=-1, keepdims=True) * (1.0 / (f - 1))
    std = jnp.sqrt(var_unbiased)
    inv = pl.reciprocal(std + eps, approx=True)               # EUP slot (vrcp)
    ln = alpha_ref[...] * (diff * inv) + beta_ref[...]        # (TR, F) f32

    # --- sublayer: dense (F -> tn slab) on the MXU, bf16 operands, f32 accum ---
    sub = jnp.dot(ln.astype(w_ref.dtype), w_ref[...],
                  preferred_element_type=jnp.float32) + b_ref[...]   # (TR, tn)

    # --- dropout (eval mode = identity) + residual add on matching x columns ---
    if tn == f:
        x_slab = x
    else:
        j = pl.program_id(1)
        col = pl.multiple_of(j * tn, 128)
        x_slab = x_ref[:, pl.ds(col, tn)].astype(jnp.float32)
    o_ref[...] = (x_slab + sub).astype(o_ref.dtype)


def skip_connection(x, alpha, beta, w, b, *, eps=EPS, row_tile=256,
                    mxu_dtype=jnp.bfloat16):
    """x: [B, S, F]; alpha, beta, b: [F]; w: [F, F]."""
    B, S, F = x.shape
    assert F >= 2, "unbiased std needs features >= 2"
    R = B * S

    # Row tile: large enough to fill the MXU M dim and amortize grid-step
    # overhead; shrunk (and rows zero-padded) for tiny inputs. Multiple of 8.
    rt = _round_up(min(row_tile, _round_up(R, 8)), 8)
    R_pad = _round_up(R, rt)

    # Output-feature (N) tile bounds per-step weight residency.
    w_mxu = w.astype(mxu_dtype)
    tn = _pick_tn(F, jnp.dtype(mxu_dtype).itemsize)
    grid = (R_pad // rt, F // tn)

    x2 = x.reshape(R, F)
    if R_pad != R:
        x2 = jnp.pad(x2, ((0, R_pad - R), (0, 0)))
    alpha2 = alpha.reshape(1, F).astype(jnp.float32)
    beta2 = beta.reshape(1, F).astype(jnp.float32)
    b2 = b.reshape(1, F).astype(jnp.float32)

    # Explicit VMEM budget: double-buffered x / out / weight-slab tiles plus
    # headroom for f32/bf16 intermediates, capped at v7x's 64 MiB physical VMEM.
    x_isz = jnp.dtype(x.dtype).itemsize
    est = 2 * (rt * F * x_isz                                  # x tile
               + rt * tn * x_isz                               # out tile
               + F * tn * jnp.dtype(mxu_dtype).itemsize        # weight slab
               + (2 * F + tn) * 4)                             # alpha/beta/bias
    vmem_limit = int(min(max(4 * est, 8 << 20), 64 << 20))

    kernel = functools.partial(_skip_kernel, eps=eps, tn=tn)
    out = pl.pallas_call(
        kernel,
        out_shape=jax.ShapeDtypeStruct((R_pad, F), x.dtype),
        grid_spec=pltpu.PrefetchScalarGridSpec(
            num_scalar_prefetch=0,
            grid=grid,
            in_specs=[
                pl.BlockSpec((rt, F), lambda i, j: (i, 0)),    # x rows (full F for stats)
                pl.BlockSpec((1, F), lambda i, j: (0, 0)),     # alpha
                pl.BlockSpec((1, F), lambda i, j: (0, 0)),     # beta
                pl.BlockSpec((F, tn), lambda i, j: (0, j)),    # sublayer weight slab (bf16)
                pl.BlockSpec((1, tn), lambda i, j: (0, j)),    # sublayer bias slab
            ],
            out_specs=pl.BlockSpec((rt, tn), lambda i, j: (i, j)),
        ),
        compiler_params=pltpu.CompilerParams(
            dimension_semantics=("parallel", "parallel"),
            vmem_limit_bytes=vmem_limit,
        ),
    )(x2, alpha2, beta2, w_mxu, b2)

    if R_pad != R:
        out = out[:R]
    return out.reshape(B, S, F)


def _ref(x, alpha, beta, w, b, eps=EPS, mxu_dtype=jnp.bfloat16):
    xf = x.astype(jnp.float32)
    mean = jnp.mean(xf, axis=-1, keepdims=True)
    var = jnp.sum((xf - mean) ** 2, axis=-1, keepdims=True) / (xf.shape[-1] - 1)
    std = jnp.sqrt(var)
    ln = alpha * ((xf - mean) / (std + eps)) + beta
    # mirror the kernel's bf16 MXU operand path (f32 accumulation)
    sub = jnp.dot(ln.astype(mxu_dtype), w.astype(mxu_dtype),
                  preferred_element_type=jnp.float32) + b
    return (xf + sub).astype(x.dtype)


if __name__ == "__main__":
    B, S, F = 2, 8, 128          # F multiple of 128 -> lane-dense output stores
    key = jax.random.PRNGKey(0)
    kx, kw, kb = jax.random.split(key, 3)

    x = jax.random.normal(kx, (B, S, F), dtype=jnp.float32)
    # LayerNormalization params as in __init__: ones / zeros
    alpha = jnp.ones((F,), dtype=jnp.float32)
    beta = jnp.zeros((F,), dtype=jnp.float32)
    # deterministic synthetic sublayer (dense F->F) params
    w = jax.random.normal(kw, (F, F), dtype=jnp.float32) * 0.05
    b = jax.random.normal(kb, (F,), dtype=jnp.float32) * 0.05

    out = skip_connection(x, alpha, beta, w, b)
    out = jax.block_until_ready(out)

    expected = _ref(x, alpha, beta, w, b)
    assert out.shape == (B, S, F)
    # Tolerance covers the approx-reciprocal (EUP) normalization vs. the exact
    # divide in the reference; both sides use bf16 MXU operands w/ f32 accum.
    assert jnp.allclose(out, expected, atol=1e-2, rtol=1e-2), "mismatch vs reference"
    print("KERNEL_OK")
</pallas_src>

<mosaic_0001>
module attributes {stable_mosaic.version = 11 : i64} {
  func.func @_skip_kernel(%arg0: i32, %arg1: i32, %arg2: memref<16x128xf32, #tpu.memory_space<vmem>>, %arg3: memref<1x128xf32, #tpu.memory_space<vmem>>, %arg4: memref<1x128xf32, #tpu.memory_space<vmem>>, %arg5: memref<128x128xbf16, #tpu.memory_space<vmem>>, %arg6: memref<1x128xf32, #tpu.memory_space<vmem>>, %arg7: memref<16x128xf32, #tpu.memory_space<vmem>>) attributes {dimension_semantics = [#tpu.dimension_semantics<parallel>, #tpu.dimension_semantics<parallel>], iteration_bounds = array<i64: 1, 1>, scalar_prefetch = 0 : i64, scratch_operands = 0 : i64, tpu.core_type = #tpu.core_type<tc>, window_params = [{transform_indices = @transform_0, window_bounds = array<i64: 16, 128>}, {pipeline_mode = #tpu.pipeline_mode<synchronous>, transform_indices = @transform_1, window_bounds = array<i64: 1, 128>}, {pipeline_mode = #tpu.pipeline_mode<synchronous>, transform_indices = @transform_2, window_bounds = array<i64: 1, 128>}, {transform_indices = @transform_3, window_bounds = array<i64: 128, 128>}, {transform_indices = @transform_4, window_bounds = array<i64: 1, 128>}, {transform_indices = @transform_5, window_bounds = array<i64: 16, 128>}]} {
    %c0 = arith.constant 0 : index
    %c0_0 = arith.constant 0 : index
    %0 = vector.load %arg2[%c0, %c0_0] : memref<16x128xf32, #tpu.memory_space<vmem>>, vector<16x128xf32>
    %cst = arith.constant dense<0.000000e+00> : vector<16xf32>
    %1 = vector.multi_reduction <add>, %0, %cst [1] : vector<16x128xf32> to vector<16xf32>
    %2 = vector.shape_cast %1 : vector<16xf32> to vector<16x1xf32>
    %cst_1 = arith.constant 1.280000e+02 : f32
    %3 = vector.broadcast %cst_1 : f32 to vector<16x1xf32>
    %4 = arith.divf %2, %3 : vector<16x1xf32>
    %5 = vector.broadcast %4 : vector<16x1xf32> to vector<16x128xf32>
    %6 = arith.subf %0, %5 : vector<16x128xf32>
    %7 = arith.mulf %6, %6 : vector<16x128xf32>
    %cst_2 = arith.constant dense<0.000000e+00> : vector<16xf32>
    %8 = vector.multi_reduction <add>, %7, %cst_2 [1] : vector<16x128xf32> to vector<16xf32>
    %9 = vector.shape_cast %8 : vector<16xf32> to vector<16x1xf32>
    %cst_3 = arith.constant 0.00787401571 : f32
    %10 = vector.broadcast %cst_3 : f32 to vector<16x1xf32>
    %11 = arith.mulf %9, %10 : vector<16x1xf32>
    %12 = math.sqrt %11 : vector<16x1xf32>
    %cst_4 = arith.constant 9.99999997E-7 : f32
    %13 = vector.broadcast %cst_4 : f32 to vector<16x1xf32>
    %14 = arith.addf %12, %13 : vector<16x1xf32>
    %15 = tpu.reciprocal %14 {approx = true} : vector<16x1xf32> -> vector<16x1xf32>
    %c0_5 = arith.constant 0 : index
    %c0_6 = arith.constant 0 : index
    %16 = vector.load %arg3[%c0_5, %c0_6] : memref<1x128xf32, #tpu.memory_space<vmem>>, vector<1x128xf32>
    %17 = vector.broadcast %15 : vector<16x1xf32> to vector<16x128xf32>
    %18 = arith.mulf %6, %17 : vector<16x128xf32>
    %19 = vector.broadcast %16 : vector<1x128xf32> to vector<16x128xf32>
    %20 = arith.mulf %19, %18 : vector<16x128xf32>
    %c0_7 = arith.constant 0 : index
    %c0_8 = arith.constant 0 : index
    %21 = vector.load %arg4[%c0_7, %c0_8] : memref<1x128xf32, #tpu.memory_space<vmem>>, vector<1x128xf32>
    %22 = vector.broadcast %21 : vector<1x128xf32> to vector<16x128xf32>
    %23 = arith.addf %20, %22 : vector<16x128xf32>
    %24 = arith.truncf %23 : vector<16x128xf32> to vector<16x128xbf16>
    %c0_9 = arith.constant 0 : index
    %c0_10 = arith.constant 0 : index
    %25 = vector.load %arg5[%c0_9, %c0_10] : memref<128x128xbf16, #tpu.memory_space<vmem>>, vector<128x128xbf16>
    %cst_11 = arith.constant dense<0.000000e+00> : vector<16x128xf32>
    %26 = tpu.matmul %24, %25, %cst_11 {dimension_numbers = #tpu.dot_dimension_numbers<[1], [0], [0], [1], [0, 0, 1, 1], [], []>} : vector<16x128xbf16>, vector<128x128xbf16>, vector<16x128xf32> -> vector<16x128xf32>
    %c0_12 = arith.constant 0 : index
    %c0_13 = arith.constant 0 : index
    %27 = vector.load %arg6[%c0_12, %c0_13] : memref<1x128xf32, #tpu.memory_space<vmem>>, vector<1x128xf32>
    %28 = vector.broadcast %27 : vector<1x128xf32> to vector<16x128xf32>
    %29 = arith.addf %26, %28 : vector<16x128xf32>
    %30 = arith.addf %0, %29 : vector<16x128xf32>
    %c0_14 = arith.constant 0 : index
    %c0_15 = arith.constant 0 : index
    %31 = vector.load %arg7[%c0_14, %c0_15] : memref<16x128xf32, #tpu.memory_space<vmem>>, vector<16x128xf32>
    tpu.vector_store %arg7[%c0_14, %c0_15], %30 {strides = array<i32>} : memref<16x128xf32, #tpu.memory_space<vmem>>, vector<16x128xf32>,
    return
  }
  func.func @transform_0(%arg0: i32, %arg1: i32) -> (i32, i32) {
    %c0_i32 = arith.constant 0 : i32
    %c0_i32_0 = arith.constant 0 : i32
    return %arg0, %c0_i32 : i32, i32
  }
  func.func @transform_1(%arg0: i32, %arg1: i32) -> (i32, i32) {
    %c0_i32 = arith.constant 0 : i32
    %c0_i32_0 = arith.constant 0 : i32
    %c0_i32_1 = arith.constant 0 : i32
    return %c0_i32, %c0_i32_0 : i32, i32
  }
  func.func @transform_2(%arg0: i32, %arg1: i32) -> (i32, i32) {
    %c0_i32 = arith.constant 0 : i32
    %c0_i32_0 = arith.constant 0 : i32
    %c0_i32_1 = arith.constant 0 : i32
    return %c0_i32, %c0_i32_0 : i32, i32
  }
  func.func @transform_3(%arg0: i32, %arg1: i32) -> (i32, i32) {
    %c0_i32 = arith.constant 0 : i32
    %c0_i32_0 = arith.constant 0 : i32
    return %c0_i32, %arg1 : i32, i32
  }
  func.func @transform_4(%arg0: i32, %arg1: i32) -> (i32, i32) {
    %c0_i32 = arith.constant 0 : i32
    %c0_i32_0 = arith.constant 0 : i32
    return %c0_i32, %arg1 : i32, i32
  }
  func.func @transform_5(%arg0: i32, %arg1: i32) -> (i32, i32) {
    %c0_i32 = arith.constant 0 : i32
    return %arg0, %arg1 : i32, i32
  }
}

</mosaic_0001>

<bundles_post_ra>
// kernel: tpu_custom_call.1
= control target key start
LH: loop header
LB: loop body
LE: loop exit
PB: predicated region body
PF: predicated region fallthrough
CT: control target
= control target key end

     0   :  { %10 = vsyncpa [#allocation3], 0  ;;  %s479_s0 = inlined_call_operand.hbm [shape: f32[16,128], index: 0, kind: input, shape index: {}]   ;;  %s480_s1 = inlined_call_operand.vmem [shape: f32[1,128], index: 1, kind: input, shape index: {}]   ;;  %s481_s2 = inlined_call_operand.vmem [shape: f32[1,128], index: 2, kind: input, shape index: {}]   ;;  %s482_s3 = inlined_call_operand.hbm [shape: bf16[128,128], index: 3, kind: input, shape index: {}]   ;;  %s483_s4 = inlined_call_operand.vmem [shape: f32[1,128], index: 4, kind: input, shape index: {}]   ;;  %s484_s5 = inlined_call_operand.hbm [shape: f32[16,128], index: 5, kind: output, shape index: {}]  }
   0x1   :  { %11 = vsyncpa [#allocation6], 0 }
   0x2   :  { %12 = vsyncpa [#allocation4], 0  ;;  %s379_s18 = smov [#allocation2]   ;;  %s307_s22 = scalar_lea.hbm %s479_s0, 256 }
   0x3   :  { %s18_s19 = sshll.u32 %s379_s18, 4  ;;  %p308_p0 = scmp.ne.s32.totalorder %s479_s0, %s307_s22  ;;  %s19_s19 = int_to_ptr.vmem [resolvable:$true] %s18_s19 }
   0x4   :  { %p311_p1 = scmp.lt.u32.totalorder %s307_s22, %s479_s0 }
   0x6   :  { %p313_p2 = pnand %p311_p1, %p308_p0 }
   0x8   :  { %316 = shalt.err (!%p313_p2)
}
   0x9   :  { %s317_s27 = scalar_lea.vmem %s19_s19, 256  ;;  %p322_p4 = scmp.lt.s32.totalorder %s19_s19, %s19_s19 }
   0xa   :  { %p318_p3 = scmp.ne.s32.totalorder %s19_s19, %s317_s27  ;;  %p323_p5 = scmp.lt.s32.totalorder %s317_s27, %s317_s27 }
   0xc   :  { %p324_p6 = por %p323_p5, %p322_p4 }
   0xe   :  { %p325_p7 = pnand %p324_p6, %p318_p3 }
  0x10   :  { %328 = shalt.err (!%p325_p7)
}
  0x11   :  { %s380_s28 = smov 128   ;;  %s381_s29 = smov 8  }
  0x12   :  { %24 = dma.hbm_to_vmem [thread:$0]  %s479_s0, 256, %s19_s19, [#allocation3], %s380_s28, %s380_s28, %s381_s29  }
  0x13   :  { %s382_s7 = smov [#allocation5]   ;;  %s329_s11 = scalar_lea.hbm %s482_s3, 1024 }
  0x14   :  { %s34_s8 = sshll.u32 %s382_s7, 4  ;;  %p330_p8 = scmp.ne.s32.totalorder %s482_s3, %s329_s11  ;;  %s35_s8 = int_to_ptr.vmem [resolvable:$true] %s34_s8 }
  0x15   :  { %p333_p9 = scmp.lt.u32.totalorder %s329_s11, %s482_s3 }
  0x17   :  { %p335_p10 = pnand %p333_p9, %p330_p8 }
  0x19   :  { %338 = shalt.err (!%p335_p10)
}
  0x1a   :  { %s339_s16 = scalar_lea.vmem %s35_s8, 1024  ;;  %p344_p12 = scmp.lt.s32.totalorder %s35_s8, %s35_s8 }
  0x1b   :  { %p340_p11 = scmp.ne.s32.totalorder %s35_s8, %s339_s16  ;;  %p345_p13 = scmp.lt.s32.totalorder %s339_s16, %s339_s16 }
  0x1d   :  { %p346_p0 = por %p345_p13, %p344_p12 }
  0x1f   :  { %p347_p1 = pnand %p346_p0, %p340_p11 }
  0x21   :  { %350 = shalt.err (!%p347_p1)
}
  0x22   :  { %s383_s0 = smov 64   ;;  %s384_s17 = smov 4  }
  0x23   :  { %40 = dma.hbm_to_vmem [thread:$0]  %s482_s3, 1024, %s35_s8, [#allocation6], %s383_s0, %s383_s0, %s384_s17  }
  0x24   :  { %373 = dma.done.wait [#allocation3], 256  }
  0x25   :  { %374 = vsyncadd [#allocation3], 4294967040 }
  0x26   :  { %375 = dma.done.wait [#allocation6], 1024  }
  0x27   :  { %376 = vsyncadd [#allocation6], 4294966272  ;;  %v445_v0 = vld [vmem:[#allocation2] sm:$0xff]  ;;  %v447_v1 = vld [vmem:[#allocation2 + $0x8] sm:$0xff]  ;;  %v385_v11 = vmov 0.0   ;;  %vm386_vm0 = vmmov 0  }
  0x28   :  { %52 = vadd.xlane.f32.xlu0 %v445_v0  ;;  %v291_v10 = vld [vmem:[#allocation5] sm:$0xff]   ;;  %262 = vmatprep.subr.bf16.mxu0 %v385_v11  ;;  %v292_v12 = vld [vmem:[#allocation5 + $0x8] sm:$0xff]   ;;  %v293_v13 = vld [vmem:[#allocation5 + $0x10] sm:$0xff]  }
  0x29   :  { %263 = vmatpush3.bf16.msra.mxu0 %v291_v10  ;;  %v294_v14 = vld [vmem:[#allocation5 + $0x18] sm:$0xff]   ;;  %v295_v15 = vld [vmem:[#allocation5 + $0x20] sm:$0xff]   ;;  %278 = vmatprep.mubr.msk.bf16.mxu0 %vm386_vm0, %v385_v11  ;;  %v296_v16 = vld [vmem:[#allocation5 + $0x28] sm:$0xff]  }
  0x2a   :  { %264 = vmatprep.subr.bf16.mxu0 %v385_v11  ;;  %v297_v17 = vld [vmem:[#allocation5 + $0x30] sm:$0xff]   ;;  %v298_v18 = vld [vmem:[#allocation5 + $0x38] sm:$0xff]  }
  0x2b   :  { %v242_v37 = vld [vmem:[%s480_s1] ss:$0 sm:$0xff]  ;;  %s387_s1 = smov [#allocation7]  }
  0x2c   :  { %54 = vadd.xlane.f32.xlu0 %v447_v1  ;;  %v243_v41 = vld [vmem:[%s481_s2] ss:$0 sm:$0xff]  ;;  %s229_s25 = sshll.u32 %s387_s1, 4  ;;  %s230_s25 = int_to_ptr.vmem [resolvable:$true] %s229_s25 }
  0x2d   :  { %265 = vmatpush3.bf16.msra.mxu0 %v292_v12  ;;  %v244_v46 = vld [vmem:[%s483_s4] ss:$0 sm:$0xff]  ;;  %s351_s2 = scalar_lea.vmem %s230_s25, 256  ;;  %p356_p3 = scmp.lt.s32.totalorder %s230_s25, %s230_s25 }
  0x2e   :  { %266 = vmatprep.subr.bf16.mxu0 %v385_v11  ;;  %p352_p2 = scmp.ne.s32.totalorder %s230_s25, %s351_s2  ;;  %p357_p4 = scmp.lt.s32.totalorder %s351_s2, %s351_s2 }
  0x30   :  { %p358_p5 = por %p357_p4, %p356_p3 }
  0x31   :  { %267 = vmatpush3.bf16.msra.mxu0 %v293_v13 }
  0x32   :  { %268 = vmatprep.subr.bf16.mxu0 %v385_v11  ;;  %p359_p6 = pnand %p358_p5, %p352_p2 }
  0x35   :  { %269 = vmatpush3.bf16.msra.mxu0 %v294_v14 }
  0x36   :  { %270 = vmatprep.subr.bf16.mxu0 %v385_v11 }
  0x39   :  { %271 = vmatpush3.bf16.msra.mxu0 %v295_v15 }
  0x3a   :  { %272 = vmatprep.subr.bf16.mxu0 %v385_v11 }
  0x3d   :  { %273 = vmatpush3.bf16.msra.mxu0 %v296_v16 }
  0x3e   :  { %274 = vmatprep.subr.bf16.mxu0 %v385_v11 }
  0x41   :  { %275 = vmatpush3.bf16.msra.mxu0 %v297_v17 }
  0x42   :  { %276 = vmatprep.subr.bf16.mxu0 %v385_v11 }
  0x45   :  { %277 = vmatpush3.bf16.msra.mxu0 %v298_v18 }
  0xb5   :  { %v53_v2 = vpop.xlane.xlu0 %52 }
  0xb6   :  { %v57_v3 = vmul.f32 0.0078125, %v53_v2 }
  0xb8   :  { %v59_v4 = vsub.f32 %v445_v0, %v57_v3 }
  0xb9   :  { %v55_v5 = vpop.xlane.xlu0 %54 }
  0xba   :  { %v58_v6 = vmul.f32 0.0078125, %v55_v5  ;;  %v61_v7 = vmul.f32 %v59_v4, %v59_v4 }
  0xbc   :  { %v60_v8 = vsub.f32 %v447_v1, %v58_v6  ;;  %63 = vadd.xlane.f32.xlu1 %v61_v7 }
  0xbe   :  { %v62_v9 = vmul.f32 %v60_v8, %v60_v8 }
  0xc0   :  { %65 = vadd.xlane.f32.xlu1 %v62_v9 }
 0x149   :  { %v64_v19 = vpop.xlane.xlu1 %63 }
 0x14a   :  { %v67_v20 = vmul.f32 0.007874016, %v64_v19 }
 0x14c   :  { %299 = vrsqrt.f32 %v67_v20  ;;  %vm71_vm1 = vcmp.eq.f32.partialorder %v67_v20, inf  ;;  %v74_v25 = vand.u32 2147483648, %v67_v20  ;;  %vm73_vm2 = vcmp.eq.f32.partialorder %v67_v20, 0.0 }
 0x14d   :  { %v66_v21 = vpop.xlane.xlu1 %65 }
 0x14e   :  { %v68_v22 = vmul.f32 0.007874016, %v66_v21 }
 0x150   :  { %301 = vrsqrt.f32 %v68_v22  ;;  %vm78_vm3 = vcmp.eq.f32.partialorder %v68_v22, inf  ;;  %v81_v31 = vand.u32 2147483648, %v68_v22  ;;  %vm80_vm4 = vcmp.eq.f32.partialorder %v68_v22, 0.0 }
 0x156   :  { %v300_v23 = vpop.eup %299 }
 0x157   :  { %v70_v24 = vmul.f32 %v300_v23, %v67_v20 }
 0x159   :  { %v72_v26 = vsel %vm71_vm1, %v67_v20, %v70_v24 }
 0x15a   :  { %v302_v27 = vpop.eup %301  ;;  %v75_v28 = vsel %vm73_vm2, %v74_v25, %v72_v26 }
 0x15b   :  { %v83_v29 = vadd.f32 1e-06, %v75_v28  ;;  %v77_v30 = vmul.f32 %v302_v27, %v68_v22 }
 0x15d   :  { %v79_v32 = vsel %vm78_vm3, %v68_v22, %v77_v30  ;;  %303 = vrcp.f32 %v83_v29 }
 0x15e   :  { %v82_v33 = vsel %vm80_vm4, %v81_v31, %v79_v32 }
 0x15f   :  { %v84_v34 = vadd.f32 1e-06, %v82_v33 }
 0x161   :  { %305 = vrcp.f32 %v84_v34 }
 0x167   :  { %v304_v35 = vpop.eup %303 }
 0x168   :  { %v88_v36 = vmul.f32 %v304_v35, %v59_v4 }
 0x16a   :  { %v96_v40 = vmul.f32 %v242_v37, %v88_v36 }
 0x16b   :  { %v306_v38 = vpop.eup %305 }
 0x16c   :  { %v89_v39 = vmul.f32 %v306_v38, %v60_v8  ;;  %v105_v43 = vadd.f32 %v243_v41, %v96_v40 }
 0x16e   :  { %v97_v42 = vmul.f32 %v242_v37, %v89_v39 }
 0x170   :  { %v106_v44 = vadd.f32 %v243_v41, %v97_v42 }
 0x172   :  { %v107_v45 = vpack.c.bf16 %v106_v44, %v105_v43 }
 0x174   :  { %279 = vmatmul.mubr.bf16.vlgmr.msra.gmra.mrb[0].mxu0 %v107_v45 }
 0x247   :  { %v213_v47 = vpop.f32.mrb[0].mxu0 }
 0x248   :  { %v214_v48 = vadd.f32 %v244_v46, %v213_v47  ;;  %v280_v49 = vpop.f32.mrb[1].mxu0 }
 0x249   :  { %v216_v50 = vpop.f32.mrb[2].mxu0 }
 0x24a   :  { %v220_v51 = vadd.f32 %v214_v48, %v445_v0  ;;  %v217_v52 = vadd.f32 %v244_v46, %v216_v50  ;;  %v281_v53 = vpop.f32.mrb[3].mxu0 }
 0x24c   :  { %222 = vst [vmem:[#allocation7] sm:$0xff] %v220_v51  ;;  %v221_v54 = vadd.f32 %v217_v52, %v447_v1 }
 0x24e   :  { %223 = vst [vmem:[#allocation7 + $0x8] sm:$0xff] %v221_v54 }
 0x24f   :  { %362 = shalt.err (!%p359_p6)
}
 0x250   :  { %s363_s27 = scalar_lea.hbm %s484_s5, 256 }
 0x251   :  { %p364_p7 = scmp.ne.s32.totalorder %s484_s5, %s363_s27  ;;  %p367_p8 = scmp.lt.u32.totalorder %s363_s27, %s484_s5 }
 0x253   :  { %p369_p9 = pnand %p367_p8, %p364_p7 }
 0x255   :  { %372 = shalt.err (!%p369_p9)
}
 0x256   :  { %235 = dma.vmem_to_hbm [thread:$0]  %s230_s25, 256, %s484_s5, [#allocation4], %s380_s28, %s380_s28, %s381_s29  }
 0x257   :  { %377 = dma.done.wait [#allocation4], 256  }
 0x258   :  { %378 = vsyncadd [#allocation4], 4294967040 }
 0x259   :  { %239 = vsyncpa [#allocation3], 1 }
 0x25a   :  { %240 = vsyncpa [#allocation6], 1 }
 0x25b   :  { %241 = vsyncpa [#allocation4], 1 }

</bundles_post_ra>
